<compile_context>
chip_gen: v7x
topology: tpu7x:2x2x1
jax: 0.10.0
libtpu: 0.0.40
codegen_flags: <defaults>
</compile_context>

<pallas_src>
from functools import partial

import jax
import jax.numpy as jnp
from jax.experimental import pallas as pl
from jax.experimental.pallas import tpu as pltpu

# ---- model configuration (consistent with the module's constraints) ----
SEQ_LEN    = 144                      # configs.seq_len  (multiple of 12)
PRED_LEN   = 24                       # configs.pred_len (multiple of 12)
WINDOW_LEN = 12
RESERVOIR  = 25
WASHOUT    = 10
INPUT_SEG  = SEQ_LEN // WINDOW_LEN    # 12
PRED_SEG   = PRED_LEN // WINDOW_LEN   # 2
N_KEEP     = INPUT_SEG - WASHOUT      # 2   (FFN input size)
HIDDEN     = 32                       # FFN hidden size

MAX_BATCH_TILE   = 512                # multiple of 8; ~15 MiB VMEM at TB=512
VMEM_LIMIT_BYTES = 48 * 1024 * 1024   # explicit (v5e default is only 16 MiB)

# Rough per-batch-element cost (for pl.CostEstimate), post-fold.
_FLOPS_PER_ELEM = 2 * (INPUT_SEG * WINDOW_LEN * RESERVOIR          # input proj
                       + (INPUT_SEG - 1) * RESERVOIR * RESERVOIR   # recurrence
                       + N_KEEP * RESERVOIR * PRED_LEN)            # folded readout
_TRANS_PER_ELEM = INPUT_SEG * RESERVOIR                            # tanh
_PARAM_BYTES = 4 * (WINDOW_LEN * RESERVOIR + RESERVOIR * RESERVOIR
                    + N_KEEP * RESERVOIR * PRED_LEN + PRED_LEN)


def _round_up(v, m):
    return ((v + m - 1) // m) * m


def _model_kernel(x_ref,        # (INPUT_SEG, TB, WINDOW_LEN)  time-major input
                  w_in_t_ref,   # (WINDOW_LEN, RESERVOIR)   == W_in.T
                  w_res_t_ref,  # (RESERVOIR, RESERVOIR)    == W_res.T
                  ro_w_ref,     # (N_KEEP*RESERVOIR, PRED_LEN)  folded readout+proj
                  ro_b_ref,     # (1, PRED_LEN)
                  out_ref):     # (TB, PRED_LEN)            lane-flat output
    tb = x_ref.shape[1]

    # ---- fused input projection: ONE (INPUT_SEG*TB,12)@(12,25) MXU matmul ----
    # TB % 8 == 0 so collapsing the two leading dims is a pure sublane-tile
    # renumbering (no relayout); the per-step slices below are tile-aligned.
    x_flat = x_ref[...].reshape(INPUT_SEG * tb, WINDOW_LEN)
    u = jnp.dot(x_flat, w_in_t_ref[...], preferred_element_type=jnp.float32)

    # ---- ESN reservoir recurrence (zero initial state) -----------------------
    # Sequential part is only 11 x ((TB,25)@(25,25) + tanh).
    w_res_t = w_res_t_ref[...]
    h = jnp.tanh(u[0:tb, :])
    kept = [h] if 0 >= WASHOUT else []             # states after washout
    for t in range(1, INPUT_SEG):                  # static unroll
        h = jnp.tanh(u[t * tb:(t + 1) * tb, :]
                     + jnp.dot(h, w_res_t, preferred_element_type=jnp.float32))
        if t >= WASHOUT:
            kept.append(h)                         # each (TB, RESERVOIR)

    # ---- folded (linear) readout FFN + projection ----------------------------
    # out = [kept0 | kept1] @ W_fold + b_fold, one (TB,50)@(50,24) matmul.
    s = jnp.concatenate(kept, axis=-1)             # (TB, N_KEEP*RESERVOIR)
    out_ref[...] = (jnp.dot(s, ro_w_ref[...], preferred_element_type=jnp.float32)
                    + ro_b_ref[...])


def init_params(key):
    """Deterministic parameter init (shapes follow the PyTorch module).
    Kernel parameters are stored pre-transposed / pre-folded; the raw layers
    are kept only for the pure-JAX reference check."""
    ks = jax.random.split(key, 8)

    def uni(k, shape, bound):
        return jax.random.uniform(k, shape, jnp.float32, -bound, bound)

    # Fixed ESN reservoir weights (small scale).
    w_in  = uni(ks[0], (RESERVOIR, WINDOW_LEN), 0.1)
    w_res = uni(ks[1], (RESERVOIR, RESERVOIR), 0.1)
    # Trainable layers: torch.nn.Linear default U(-1/sqrt(fan_in), 1/sqrt(fan_in)).
    b1 = 1.0 / (N_KEEP ** 0.5)
    b2 = 1.0 / (HIDDEN ** 0.5)
    b3 = 1.0 / (RESERVOIR ** 0.5)
    fc1_w  = uni(ks[2], (HIDDEN, N_KEEP), b1)       # nn.Linear(N_KEEP, 32)
    fc1_b  = uni(ks[3], (HIDDEN,), b1)
    fc2_w  = uni(ks[4], (PRED_SEG, HIDDEN), b2)     # nn.Linear(32, PRED_SEG)
    fc2_b  = uni(ks[5], (PRED_SEG,), b2)
    proj_w = uni(ks[6], (WINDOW_LEN, RESERVOIR), b3)  # nn.Linear(25, 12)
    proj_b = uni(ks[7], (WINDOW_LEN,), b3)

    # ---- exact fold of the linear readout FFN + projection + flatten --------
    # FFN has no activation between fc1 and fc2, so
    #   readout(x) = x @ Wc.T + bc,  Wc = fc2_w @ fc1_w,  bc = fc2_w @ fc1_b + fc2_b
    # and with the projection and the final reshape(B, -1):
    #   out[b, k*12 + w] = sum_{i,r} kept[i][b,r] * Wc[k,i] * proj_w_t[r,w]
    #                      + bc[k] * colsum(proj_w_t)[w] + proj_b[w]
    Wc = fc2_w @ fc1_w                              # (PRED_SEG, N_KEEP)
    bc = fc2_w @ fc1_b + fc2_b                      # (PRED_SEG,)
    proj_w_t = proj_w.T                             # (RESERVOIR, WINDOW_LEN)
    ro_w = (Wc.T[:, None, :, None] * proj_w_t[None, :, None, :]
            ).reshape(N_KEEP * RESERVOIR, PRED_SEG * WINDOW_LEN)   # (50, 24)
    ro_b = (bc[:, None] * proj_w_t.sum(axis=0)[None, :]
            + proj_b[None, :]).reshape(1, PRED_LEN)                # (1, 24)

    return dict(
        # kernel parameters
        w_in_t  = jnp.transpose(w_in),              # (WINDOW_LEN, RESERVOIR)
        w_res_t = jnp.transpose(w_res),             # (RESERVOIR, RESERVOIR)
        ro_w    = ro_w,
        ro_b    = ro_b,
        # raw layers (reference check only)
        fc1_w=fc1_w, fc1_b=fc1_b, fc2_w=fc2_w, fc2_b=fc2_b,
        proj_w=proj_w, proj_b=proj_b,
    )


@partial(jax.jit, static_argnames=("batch_tile",))
def model_forward(x, params, *, batch_tile=MAX_BATCH_TILE):
    """x: (B, SEQ_LEN, 1) float32  ->  (B, PRED_LEN, 1) float32."""
    assert batch_tile % 8 == 0, "batch_tile must be a multiple of 8"
    B = x.shape[0]
    # Glue (matches: squeeze(-1) + reshape into segments), then time-major.
    x_seg = x[..., 0].reshape(B, INPUT_SEG, WINDOW_LEN).astype(jnp.float32)
    x_tm  = jnp.transpose(x_seg, (1, 0, 2))          # (INPUT_SEG, B, WINDOW_LEN)

    # Batch tile: multiple of 8 (sublane rule).  When the whole batch would fit
    # in a single tile, cap the tile at ~ceil(B/2) so the "parallel" grid has at
    # least 2 steps and both v7x TensorCores get work (no effect on v5e/v6e).
    tb = min(batch_tile, max(8, _round_up(pl.cdiv(B, 2), 8)))
    nb = pl.cdiv(B, tb)
    b_pad = nb * tb
    if b_pad != B:
        x_tm = jnp.pad(x_tm, ((0, 0), (0, b_pad - B), (0, 0)))

    cost = pl.CostEstimate(
        flops=int(b_pad * _FLOPS_PER_ELEM),
        transcendentals=int(b_pad * _TRANS_PER_ELEM),
        bytes_accessed=int(4 * b_pad * (SEQ_LEN + PRED_LEN) + nb * _PARAM_BYTES),
    )

    out = pl.pallas_call(
        _model_kernel,
        out_shape=jax.ShapeDtypeStruct((b_pad, PRED_LEN), jnp.float32),
        grid=(nb,),
        in_specs=[
            pl.BlockSpec((INPUT_SEG, tb, WINDOW_LEN),    lambda i: (0, i, 0)),
            pl.BlockSpec((WINDOW_LEN, RESERVOIR),        lambda i: (0, 0)),
            pl.BlockSpec((RESERVOIR, RESERVOIR),         lambda i: (0, 0)),
            pl.BlockSpec((N_KEEP * RESERVOIR, PRED_LEN), lambda i: (0, 0)),
            pl.BlockSpec((1, PRED_LEN),                  lambda i: (0, 0)),
        ],
        out_specs=pl.BlockSpec((tb, PRED_LEN), lambda i: (i, 0)),
        compiler_params=pltpu.CompilerParams(
            dimension_semantics=("parallel",),
            vmem_limit_bytes=VMEM_LIMIT_BYTES),
        cost_estimate=cost,
    )(
        x_tm,
        params['w_in_t'], params['w_res_t'],
        params['ro_w'], params['ro_b'],
    )

    # Glue (matches: reshape(B, -1) -> unsqueeze(1) -> permute(0, 2, 1)).
    y = out[:B]                                      # drop batch padding
    return y[:, :, None]                             # (B, PRED_LEN, 1)


def _reference_forward(x, params):
    """Pure-JAX mirror of the PyTorch forward (uses the raw, unfolded layers)."""
    B = x.shape[0]
    w_in  = jnp.transpose(params['w_in_t'])          # (RESERVOIR, WINDOW_LEN)
    w_res = jnp.transpose(params['w_res_t'])         # (RESERVOIR, RESERVOIR)
    xs = x[..., 0].reshape(B, INPUT_SEG, WINDOW_LEN).astype(jnp.float32)
    h = jnp.zeros((B, RESERVOIR), jnp.float32)
    states = []
    for t in range(INPUT_SEG):
        h = jnp.tanh(xs[:, t, :] @ w_in.T + h @ w_res.T)
        states.append(h)
    s = jnp.stack(states, axis=1)[:, WASHOUT:, :]    # (B, N_KEEP, RESERVOIR)
    s = jnp.transpose(s, (0, 2, 1))                  # (B, RESERVOIR, N_KEEP)
    h1 = jnp.einsum('brn,hn->brh', s, params['fc1_w']) + params['fc1_b']
    h2 = jnp.einsum('brh,ph->brp', h1, params['fc2_w']) + params['fc2_b']
    h2 = jnp.transpose(h2, (0, 2, 1))                # (B, PRED_SEG, RESERVOIR)
    y = jnp.einsum('bpr,wr->bpw', h2, params['proj_w']) + params['proj_b']
    return y.reshape(B, PRED_LEN)[:, :, None]


if __name__ == "__main__":
    key = jax.random.PRNGKey(0)
    pkey, k1, k2, k3, k4 = jax.random.split(key, 5)
    params = init_params(pkey)

    # Small default case: B=2 (padded to one 8-row tile).
    x = jax.random.normal(k1, (2, SEQ_LEN, 1), dtype=jnp.float32)
    y = model_forward(x, params)
    jax.block_until_ready(y)
    assert y.shape == (2, PRED_LEN, 1), y.shape
    assert bool(jnp.all(jnp.isfinite(y)))
    assert bool(jnp.allclose(y, _reference_forward(x, params),
                             rtol=1e-5, atol=2e-4))

    # Multi-block case: B=16, tile=8 -> grid=(2,) "parallel" over batch.
    x16 = jax.random.normal(k2, (16, SEQ_LEN, 1), dtype=jnp.float32)
    y16 = model_forward(x16, params, batch_tile=8)
    jax.block_until_ready(y16)
    assert y16.shape == (16, PRED_LEN, 1)
    assert bool(jnp.allclose(y16, _reference_forward(x16, params),
                             rtol=1e-5, atol=2e-4))

    # Padded case: B=10, tile=8 -> padded to 16, grid=(2,).
    x10 = jax.random.normal(k3, (10, SEQ_LEN, 1), dtype=jnp.float32)
    y10 = model_forward(x10, params, batch_tile=8)
    jax.block_until_ready(y10)
    assert y10.shape == (10, PRED_LEN, 1)
    assert bool(jnp.allclose(y10, _reference_forward(x10, params),
                             rtol=1e-5, atol=2e-4))

    # Default-tile case with auto 2-way split: B=64 -> tb=32, grid=(2,).
    x64 = jax.random.normal(k4, (64, SEQ_LEN, 1), dtype=jnp.float32)
    y64 = model_forward(x64, params)
    jax.block_until_ready(y64)
    assert y64.shape == (64, PRED_LEN, 1)
    assert bool(jnp.allclose(y64, _reference_forward(x64, params),
                             rtol=1e-5, atol=2e-4))

    print("KERNEL_OK")
</pallas_src>

<mosaic_0001>
module attributes {stable_mosaic.version = 11 : i64} {
  func.func @_model_kernel(%arg0: i32, %arg1: memref<12x8x12xf32, #tpu.memory_space<vmem>>, %arg2: memref<12x25xf32, #tpu.memory_space<vmem>>, %arg3: memref<25x25xf32, #tpu.memory_space<vmem>>, %arg4: memref<50x24xf32, #tpu.memory_space<vmem>>, %arg5: memref<1x24xf32, #tpu.memory_space<vmem>>, %arg6: memref<8x24xf32, #tpu.memory_space<vmem>>) attributes {dimension_semantics = [#tpu.dimension_semantics<parallel>], iteration_bounds = array<i64: 1>, scalar_prefetch = 0 : i64, scratch_operands = 0 : i64, tpu.core_type = #tpu.core_type<tc>, window_params = [{transform_indices = @transform_0, window_bounds = array<i64: 12, 8, 12>}, {pipeline_mode = #tpu.pipeline_mode<synchronous>, transform_indices = @transform_1, window_bounds = array<i64: 12, 25>}, {pipeline_mode = #tpu.pipeline_mode<synchronous>, transform_indices = @transform_2, window_bounds = array<i64: 25, 25>}, {pipeline_mode = #tpu.pipeline_mode<synchronous>, transform_indices = @transform_3, window_bounds = array<i64: 50, 24>}, {pipeline_mode = #tpu.pipeline_mode<synchronous>, transform_indices = @transform_4, window_bounds = array<i64: 1, 24>}, {transform_indices = @transform_5, window_bounds = array<i64: 8, 24>}]} {
    %c0 = arith.constant 0 : index
    %c0_0 = arith.constant 0 : index
    %c0_1 = arith.constant 0 : index
    %0 = vector.load %arg1[%c0, %c0_0, %c0_1] : memref<12x8x12xf32, #tpu.memory_space<vmem>>, vector<12x8x12xf32>
    %1 = vector.shape_cast %0 : vector<12x8x12xf32> to vector<96x12xf32>
    %c0_2 = arith.constant 0 : index
    %c0_3 = arith.constant 0 : index
    %2 = vector.load %arg2[%c0_2, %c0_3] : memref<12x25xf32, #tpu.memory_space<vmem>>, vector<12x25xf32>
    %cst = arith.constant dense<0.000000e+00> : vector<96x25xf32>
    %3 = tpu.matmul %1, %2, %cst {dimension_numbers = #tpu.dot_dimension_numbers<[1], [0], [0], [1], [0, 0, 1, 1], [], []>} : vector<96x12xf32>, vector<12x25xf32>, vector<96x25xf32> -> vector<96x25xf32>
    %c0_4 = arith.constant 0 : index
    %c0_5 = arith.constant 0 : index
    %4 = vector.load %arg3[%c0_4, %c0_5] : memref<25x25xf32, #tpu.memory_space<vmem>>, vector<25x25xf32>
    %5 = vector.extract_strided_slice %3 {offsets = [0, 0], sizes = [8, 25], strides = [1, 1]} : vector<96x25xf32> to vector<8x25xf32>
    %6 = math.tanh %5 : vector<8x25xf32>
    %7 = vector.extract_strided_slice %3 {offsets = [8, 0], sizes = [8, 25], strides = [1, 1]} : vector<96x25xf32> to vector<8x25xf32>
    %cst_6 = arith.constant dense<0.000000e+00> : vector<8x25xf32>
    %8 = tpu.matmul %6, %4, %cst_6 {dimension_numbers = #tpu.dot_dimension_numbers<[1], [0], [0], [1], [0, 0, 1, 1], [], []>} : vector<8x25xf32>, vector<25x25xf32>, vector<8x25xf32> -> vector<8x25xf32>
    %9 = arith.addf %7, %8 : vector<8x25xf32>
    %10 = math.tanh %9 : vector<8x25xf32>
    %11 = vector.extract_strided_slice %3 {offsets = [16, 0], sizes = [8, 25], strides = [1, 1]} : vector<96x25xf32> to vector<8x25xf32>
    %cst_7 = arith.constant dense<0.000000e+00> : vector<8x25xf32>
    %12 = tpu.matmul %10, %4, %cst_7 {dimension_numbers = #tpu.dot_dimension_numbers<[1], [0], [0], [1], [0, 0, 1, 1], [], []>} : vector<8x25xf32>, vector<25x25xf32>, vector<8x25xf32> -> vector<8x25xf32>
    %13 = arith.addf %11, %12 : vector<8x25xf32>
    %14 = math.tanh %13 : vector<8x25xf32>
    %15 = vector.extract_strided_slice %3 {offsets = [24, 0], sizes = [8, 25], strides = [1, 1]} : vector<96x25xf32> to vector<8x25xf32>
    %cst_8 = arith.constant dense<0.000000e+00> : vector<8x25xf32>
    %16 = tpu.matmul %14, %4, %cst_8 {dimension_numbers = #tpu.dot_dimension_numbers<[1], [0], [0], [1], [0, 0, 1, 1], [], []>} : vector<8x25xf32>, vector<25x25xf32>, vector<8x25xf32> -> vector<8x25xf32>
    %17 = arith.addf %15, %16 : vector<8x25xf32>
    %18 = math.tanh %17 : vector<8x25xf32>
    %19 = vector.extract_strided_slice %3 {offsets = [32, 0], sizes = [8, 25], strides = [1, 1]} : vector<96x25xf32> to vector<8x25xf32>
    %cst_9 = arith.constant dense<0.000000e+00> : vector<8x25xf32>
    %20 = tpu.matmul %18, %4, %cst_9 {dimension_numbers = #tpu.dot_dimension_numbers<[1], [0], [0], [1], [0, 0, 1, 1], [], []>} : vector<8x25xf32>, vector<25x25xf32>, vector<8x25xf32> -> vector<8x25xf32>
    %21 = arith.addf %19, %20 : vector<8x25xf32>
    %22 = math.tanh %21 : vector<8x25xf32>
    %23 = vector.extract_strided_slice %3 {offsets = [40, 0], sizes = [8, 25], strides = [1, 1]} : vector<96x25xf32> to vector<8x25xf32>
    %cst_10 = arith.constant dense<0.000000e+00> : vector<8x25xf32>
    %24 = tpu.matmul %22, %4, %cst_10 {dimension_numbers = #tpu.dot_dimension_numbers<[1], [0], [0], [1], [0, 0, 1, 1], [], []>} : vector<8x25xf32>, vector<25x25xf32>, vector<8x25xf32> -> vector<8x25xf32>
    %25 = arith.addf %23, %24 : vector<8x25xf32>
    %26 = math.tanh %25 : vector<8x25xf32>
    %27 = vector.extract_strided_slice %3 {offsets = [48, 0], sizes = [8, 25], strides = [1, 1]} : vector<96x25xf32> to vector<8x25xf32>
    %cst_11 = arith.constant dense<0.000000e+00> : vector<8x25xf32>
    %28 = tpu.matmul %26, %4, %cst_11 {dimension_numbers = #tpu.dot_dimension_numbers<[1], [0], [0], [1], [0, 0, 1, 1], [], []>} : vector<8x25xf32>, vector<25x25xf32>, vector<8x25xf32> -> vector<8x25xf32>
    %29 = arith.addf %27, %28 : vector<8x25xf32>
    %30 = math.tanh %29 : vector<8x25xf32>
    %31 = vector.extract_strided_slice %3 {offsets = [56, 0], sizes = [8, 25], strides = [1, 1]} : vector<96x25xf32> to vector<8x25xf32>
    %cst_12 = arith.constant dense<0.000000e+00> : vector<8x25xf32>
    %32 = tpu.matmul %30, %4, %cst_12 {dimension_numbers = #tpu.dot_dimension_numbers<[1], [0], [0], [1], [0, 0, 1, 1], [], []>} : vector<8x25xf32>, vector<25x25xf32>, vector<8x25xf32> -> vector<8x25xf32>
    %33 = arith.addf %31, %32 : vector<8x25xf32>
    %34 = math.tanh %33 : vector<8x25xf32>
    %35 = vector.extract_strided_slice %3 {offsets = [64, 0], sizes = [8, 25], strides = [1, 1]} : vector<96x25xf32> to vector<8x25xf32>
    %cst_13 = arith.constant dense<0.000000e+00> : vector<8x25xf32>
    %36 = tpu.matmul %34, %4, %cst_13 {dimension_numbers = #tpu.dot_dimension_numbers<[1], [0], [0], [1], [0, 0, 1, 1], [], []>} : vector<8x25xf32>, vector<25x25xf32>, vector<8x25xf32> -> vector<8x25xf32>
    %37 = arith.addf %35, %36 : vector<8x25xf32>
    %38 = math.tanh %37 : vector<8x25xf32>
    %39 = vector.extract_strided_slice %3 {offsets = [72, 0], sizes = [8, 25], strides = [1, 1]} : vector<96x25xf32> to vector<8x25xf32>
    %cst_14 = arith.constant dense<0.000000e+00> : vector<8x25xf32>
    %40 = tpu.matmul %38, %4, %cst_14 {dimension_numbers = #tpu.dot_dimension_numbers<[1], [0], [0], [1], [0, 0, 1, 1], [], []>} : vector<8x25xf32>, vector<25x25xf32>, vector<8x25xf32> -> vector<8x25xf32>
    %41 = arith.addf %39, %40 : vector<8x25xf32>
    %42 = math.tanh %41 : vector<8x25xf32>
    %43 = vector.extract_strided_slice %3 {offsets = [80, 0], sizes = [8, 25], strides = [1, 1]} : vector<96x25xf32> to vector<8x25xf32>
    %cst_15 = arith.constant dense<0.000000e+00> : vector<8x25xf32>
    %44 = tpu.matmul %42, %4, %cst_15 {dimension_numbers = #tpu.dot_dimension_numbers<[1], [0], [0], [1], [0, 0, 1, 1], [], []>} : vector<8x25xf32>, vector<25x25xf32>, vector<8x25xf32> -> vector<8x25xf32>
    %45 = arith.addf %43, %44 : vector<8x25xf32>
    %46 = math.tanh %45 : vector<8x25xf32>
    %47 = vector.extract_strided_slice %3 {offsets = [88, 0], sizes = [8, 25], strides = [1, 1]} : vector<96x25xf32> to vector<8x25xf32>
    %cst_16 = arith.constant dense<0.000000e+00> : vector<8x25xf32>
    %48 = tpu.matmul %46, %4, %cst_16 {dimension_numbers = #tpu.dot_dimension_numbers<[1], [0], [0], [1], [0, 0, 1, 1], [], []>} : vector<8x25xf32>, vector<25x25xf32>, vector<8x25xf32> -> vector<8x25xf32>
    %49 = arith.addf %47, %48 : vector<8x25xf32>
    %50 = math.tanh %49 : vector<8x25xf32>
    %51 = tpu.concatenate %46, %50 in 1 : vector<8x25xf32>, vector<8x25xf32> -> vector<8x50xf32>
    %c0_17 = arith.constant 0 : index
    %c0_18 = arith.constant 0 : index
    %52 = vector.load %arg4[%c0_17, %c0_18] : memref<50x24xf32, #tpu.memory_space<vmem>>, vector<50x24xf32>
    %cst_19 = arith.constant dense<0.000000e+00> : vector<8x24xf32>
    %53 = tpu.matmul %51, %52, %cst_19 {dimension_numbers = #tpu.dot_dimension_numbers<[1], [0], [0], [1], [0, 0, 1, 1], [], []>} : vector<8x50xf32>, vector<50x24xf32>, vector<8x24xf32> -> vector<8x24xf32>
    %c0_20 = arith.constant 0 : index
    %c0_21 = arith.constant 0 : index
    %54 = vector.load %arg5[%c0_20, %c0_21] : memref<1x24xf32, #tpu.memory_space<vmem>>, vector<1x24xf32>
    %55 = vector.broadcast %54 : vector<1x24xf32> to vector<8x24xf32>
    %56 = arith.addf %53, %55 : vector<8x24xf32>
    %c0_22 = arith.constant 0 : index
    %c0_23 = arith.constant 0 : index
    %57 = vector.load %arg6[%c0_22, %c0_23] : memref<8x24xf32, #tpu.memory_space<vmem>>, vector<8x24xf32>
    tpu.vector_store %arg6[%c0_22, %c0_23], %56 {strides = array<i32>} : memref<8x24xf32, #tpu.memory_space<vmem>>, vector<8x24xf32>,
    return
  }
  func.func @transform_0(%arg0: i32) -> (i32, i32, i32) {
    %c0_i32 = arith.constant 0 : i32
    %c0_i32_0 = arith.constant 0 : i32
    %c0_i32_1 = arith.constant 0 : i32
    return %c0_i32, %arg0, %c0_i32_0 : i32, i32, i32
  }
  func.func @transform_1(%arg0: i32) -> (i32, i32) {
    %c0_i32 = arith.constant 0 : i32
    %c0_i32_0 = arith.constant 0 : i32
    %c0_i32_1 = arith.constant 0 : i32
    return %c0_i32, %c0_i32_0 : i32, i32
  }
  func.func @transform_2(%arg0: i32) -> (i32, i32) {
    %c0_i32 = arith.constant 0 : i32
    %c0_i32_0 = arith.constant 0 : i32
    %c0_i32_1 = arith.constant 0 : i32
    return %c0_i32, %c0_i32_0 : i32, i32
  }
  func.func @transform_3(%arg0: i32) -> (i32, i32) {
    %c0_i32 = arith.constant 0 : i32
    %c0_i32_0 = arith.constant 0 : i32
    %c0_i32_1 = arith.constant 0 : i32
    return %c0_i32, %c0_i32_0 : i32, i32
  }
  func.func @transform_4(%arg0: i32) -> (i32, i32) {
    %c0_i32 = arith.constant 0 : i32
    %c0_i32_0 = arith.constant 0 : i32
    %c0_i32_1 = arith.constant 0 : i32
    return %c0_i32, %c0_i32_0 : i32, i32
  }
  func.func @transform_5(%arg0: i32) -> (i32, i32) {
    %c0_i32 = arith.constant 0 : i32
    %c0_i32_0 = arith.constant 0 : i32
    return %arg0, %c0_i32 : i32, i32
  }
}

</mosaic_0001>

<bundles_post_ra>
// kernel: squeeze.1
= control target key start
LH: loop header
LB: loop body
LE: loop exit
PB: predicated region body
PF: predicated region fallthrough
CT: control target
= control target key end

     0   :  { %s112_s10 = smov 116   ;;  %vm77_vm0 = vcmask 982016   ;;  %vm11_vm1 = vcmask 97280   ;;  %s113_s11 = smov 92   ;;  %vm81_vm2 = vcmask 64512   ;;  %vm84_vm3 = vcmask 97344   ;;  %s188_s0 = inlined_call_operand.vmem [shape: f32[2,144], index: 0, kind: input, shape index: {}]   ;;  %s189_s1 = inlined_call_operand.vmem [shape: f32[2,12,12], index: 1, kind: output, shape index: {}]  }
   0x1   :  { %v87_v0 = vld [vmem:[%s188_s0 + $0x2] sm:$0x3]  ;;  %v8_v1 = vld [vmem:[%s188_s0] sm:$0x3]  ;;  %s111_s0 = smov 124   ;;  %s114_s12 = smov 104  }
   0x2   :  { %7 = vst [vmem:[#allocation0 + $0x8] sm:$0x3] %v87_v0  ;;  %9 = vst [vmem:[#allocation0] sm:$0x3] %v8_v1  ;;  %s115_s15 = smov 8   ;;  %s116_s16 = smov 80  }
   0x3   :  { %s117_s17 = smov 68   ;;  %s118_s18 = smov 56  }
   0x4   :  { %s119_s19 = smov 44   ;;  %s120_s20 = smov 32  }
   0x5   :  { %s121_s21 = smov 20  }
   0x9   :  { %v14_v2 = vld [vmem:[#allocation0 + $0x8] sm:$0x3]   ;;  %v20_v3 = vld [vmem:[#allocation0] sm:$0x3]  }
   0xa   :  { %15 = vrot.lane.b32.xlu0 %v14_v2, %s111_s0  ;;  %21 = vrot.lane.b32.xlu1 %v20_v3, %s112_s10  ;;  %v32_v4 = vld [vmem:[#allocation0] sm:$0x3]   ;;  %v76_v7 = vld [vmem:[#allocation0 + $0x8] sm:$0x3]  }
   0xb   :  { %v26_v5 = vld [vmem:[#allocation0] sm:$0x3]  }
   0xc   :  { %v74_v6 = vld [vmem:[#allocation0] sm:$0x3]  }
   0xd   :  { %v10_v8 = vld [vmem:[#allocation0] sm:$0x3]   ;;  %v78_v9 = vsel %vm77_vm0, %v76_v7, %v74_v6 }
   0xe   :  { %33 = vrot.lane.b32.xlu0 %v32_v4, %s113_s11  ;;  %27 = vrot.lane.b32.xlu1 %v26_v5, %s114_s12  ;;  %12 = vst.msk [vmem:[%s189_s1] ss:$16 sm:$0x3] %vm11_vm1, %v10_v8   ;;  %v38_v10 = vld [vmem:[#allocation0] sm:$0x3]  }
   0xf   :  { %v44_v11 = vld [vmem:[#allocation0] sm:$0x3]  }
  0x10   :  { %v50_v12 = vld [vmem:[#allocation0] sm:$0x3]  }
  0x11   :  { %v56_v13 = vld [vmem:[#allocation0] sm:$0x3]  }
  0x12   :  { %79 = vrot.lane.b32.xlu0 %v78_v9, %s115_s15  ;;  %39 = vrot.lane.b32.xlu1 %v38_v10, %s116_s16  ;;  %v62_v14 = vld [vmem:[#allocation0] sm:$0x3]  }
  0x13   :  { %v68_v15 = vld [vmem:[#allocation0] sm:$0x3]  }
  0x16   :  { %45 = vrot.lane.b32.xlu0 %v44_v11, %s117_s17  ;;  %51 = vrot.lane.b32.xlu1 %v50_v12, %s118_s18 }
  0x1a   :  { %57 = vrot.lane.b32.xlu0 %v56_v13, %s119_s19  ;;  %63 = vrot.lane.b32.xlu1 %v62_v14, %s120_s20 }
  0x1e   :  { %69 = vrot.lane.b32.xlu0 %v68_v15, %s121_s21 }
  0x7c   :  { %v16_v16 = vpop.permute.xlu0 %15   ;;  %v22_v17 = vpop.permute.xlu1 %21  }
  0x7d   :  { %88 = vst.msk [vmem:[%s189_s1 + $0xb] ss:$16 sm:$0x3] %vm11_vm1, %v16_v16   ;;  %89 = vst.msk [vmem:[%s189_s1 + $0x1] ss:$16 sm:$0x3] %vm11_vm1, %v22_v17  }
  0x80   :  { %v34_v18 = vpop.permute.xlu0 %33   ;;  %v28_v19 = vpop.permute.xlu1 %27  }
  0x81   :  { %91 = vst.msk [vmem:[%s189_s1 + $0x3] ss:$16 sm:$0x3] %vm11_vm1, %v34_v18   ;;  %90 = vst.msk [vmem:[%s189_s1 + $0x2] ss:$16 sm:$0x3] %vm11_vm1, %v28_v19  }
  0x84   :  { %v80_v20 = vpop.permute.xlu0 %79   ;;  %v40_v21 = vpop.permute.xlu1 %39  }
  0x85   :  { %98 = vst.msk [vmem:[%s189_s1 + $0xa] ss:$16 sm:$0x3] %vm81_vm2, %v80_v20  }
  0x86   :  { %92 = vst.msk [vmem:[%s189_s1 + $0x4] ss:$16 sm:$0x3] %vm11_vm1, %v40_v21  }
  0x87   :  { %99 = vst.msk [vmem:[%s189_s1 + $0xa] ss:$16 sm:$0x3] %vm84_vm3, %v80_v20  }
  0x88   :  { %v46_v22 = vpop.permute.xlu0 %45   ;;  %v52_v23 = vpop.permute.xlu1 %51  }
  0x89   :  { %93 = vst.msk [vmem:[%s189_s1 + $0x5] ss:$16 sm:$0x3] %vm11_vm1, %v46_v22   ;;  %94 = vst.msk [vmem:[%s189_s1 + $0x6] ss:$16 sm:$0x3] %vm11_vm1, %v52_v23  }
  0x8c   :  { %v58_v24 = vpop.permute.xlu0 %57   ;;  %v64_v25 = vpop.permute.xlu1 %63  }
  0x8d   :  { %95 = vst.msk [vmem:[%s189_s1 + $0x7] ss:$16 sm:$0x3] %vm11_vm1, %v58_v24   ;;  %96 = vst.msk [vmem:[%s189_s1 + $0x8] ss:$16 sm:$0x3] %vm11_vm1, %v64_v25  }
  0x90   :  { %v70_v26 = vpop.permute.xlu0 %69  }
  0x91   :  { %97 = vst.msk [vmem:[%s189_s1 + $0x9] ss:$16 sm:$0x3] %vm11_vm1, %v70_v26  }

// kernel: model_forward.1
= control target key start
LH: loop header
LB: loop body
LE: loop exit
PB: predicated region body
PF: predicated region fallthrough
CT: control target
= control target key end

     0   :  { %vm71_vm0 = vcmask 1043456   ;;  %vm34_vm1 = vcmask 97280   ;;  %vm1534_vm2 = vmmov 1   ;;  %v1535_v5 = vmov 0.0|0.0   ;;  %s1538_s13 = smov 25   ;;  %s1781_s1 = inlined_call_operand.vmem [shape: f32[12,25], index: 1, kind: input, shape index: {}]   ;;  %s1782_s0 = inlined_call_operand.vmem [shape: f32[12,8,12], index: 0, kind: input, shape index: {}]   ;;  %s1783_s2 = inlined_call_operand.vmem [shape: f32[25,25], index: 2, kind: input, shape index: {}]   ;;  %s1784_s3 = inlined_call_operand.vmem [shape: f32[50,24], index: 3, kind: input, shape index: {}]   ;;  %s1785_s4 = inlined_call_operand.vmem [shape: f32[1,24], index: 4, kind: input, shape index: {}]   ;;  %s1786_s5 = inlined_call_operand.vmem [shape: f32[8,24], index: 5, kind: output, shape index: {}]  }
   0x1   :  { %v32_v0 = vld [vmem:[%s1781_s1] sm:$0xff]  ;;  %v33_v1 = vld [vmem:[%s1781_s1 + $0x8] sm:$0xf]  ;;  %vm1414_vm3 = vmpackc.low %vm71_vm0, %vm1534_vm2  ;;  %1419 = vmatprep.subr.bf16.mxu1 %v1535_v5  ;;  %vm1536_vm4 = vmmov 0   ;;  %v1537_v9 = vmov 0.0   ;;  %vm209_vm5 = vcmask 1040384  }
   0x2   :  { %v1413_v2 = vpack.c.bf16 %v33_v1, %v32_v0  ;;  %v20_v3 = vld [vmem:[%s1782_s0] sm:$0xff]  ;;  %v21_v4 = vld [vmem:[%s1782_s0 + $0x8] sm:$0xff]  ;;  %v202_v8 = vld [vmem:[%s1783_s2 + $0x10] sm:$0xff]  ;;  %1283 = vmatprep.mubr.msk.f32.mxu1 %vm1536_vm4, %v1537_v9  ;;  %vm205_vm7 = vcmask 203776   ;;  %vm1058_vm8 = vcmask 1041408   ;;  %vm1054_vm9 = vcmask 408576  }
   0x3   :  { %1257 = vmatprep.mubr.msk.f32.mxu0 %vm34_vm1, %v20_v3  ;;  %v200_v6 = vld [vmem:[%s1783_s2] sm:$0xff]  ;;  %v201_v7 = vld [vmem:[%s1783_s2 + $0x8] sm:$0xff]  ;;  %v203_v11 = vld [vmem:[%s1783_s2 + $0x18] sm:$0x1]  ;;  %vm1132_vm10 = vcmask 195584  }
   0x4   :  { %1415 = vmatprep.subr.msk.bf16.mxu0 %vm1414_vm3, %v1413_v2  ;;  %v1596_v10 = vpack.c.bf16 %v201_v7, %v200_v6  ;;  %v1603_v12 = vpack.c.bf16 %v203_v11, %v202_v8  ;;  %vm1607_vm6 = vmpackc.low %vm209_vm5, %vm1534_vm2  ;;  %v22_v17 = vld [vmem:[%s1782_s0 + $0x10] sm:$0xff]  ;;  %v23_v18 = vld [vmem:[%s1782_s0 + $0x18] sm:$0xff] }
   0x5   :  { %1418 = vmatpush3.bf16.msk.msra.mxu0 %vm1414_vm3, %v1413_v2  ;;  %v24_v29 = vld [vmem:[%s1782_s0 + $0x20] sm:$0xff]  ;;  %v25_v30 = vld [vmem:[%s1782_s0 + $0x28] sm:$0xff]  ;;  %v26_v37 = vld [vmem:[%s1782_s0 + $0x30] sm:$0xff] }
   0x6   :  { %1454 = vmatprep.subr.bf16.mxu0 %v1535_v5  ;;  %1421 = vmatpush3.bf16.msra.mxu1 %v1596_v10  ;;  %v27_v42 = vld [vmem:[%s1782_s0 + $0x38] sm:$0xff]  ;;  %v28_v43 = vld [vmem:[%s1782_s0 + $0x40] sm:$0xff]  ;;  %v29_v44 = vld [vmem:[%s1782_s0 + $0x48] sm:$0xff] }
   0x7   :  { %1422 = vmatprep.subr.bf16.mxu1 %v1535_v5  ;;  %v30_v45 = vld [vmem:[%s1782_s0 + $0x50] sm:$0xff]  ;;  %v31_v46 = vld [vmem:[%s1782_s0 + $0x58] sm:$0xff]  ;;  %v1041_v13 = vld [vmem:[%s1784_s3 + $0x8] sm:$0xff] }
   0x8   :  { %1258 = vmatmul.mubr.msk.f32.vlgmr.msra.gmra.mrb[0].mxu0 %vm34_vm1, %v21_v4 }
   0x9   :  { %1456 = vmatpush3.bf16.msra.mxu0 %v1596_v10  ;;  %1260 = vmatprep.mubr.msk.f32.mxu0 %vm34_vm1, %v22_v17  ;;  %v1042_v17 = vld [vmem:[%s1784_s3 + $0x10] sm:$0xff] }
   0xa   :  { %1457 = vmatprep.subr.bf16.mxu0 %v1535_v5  ;;  %1425 = vmatpush3.bf16.msk.msra.mxu1 %vm1607_vm6, %v1603_v12 }
   0xb   :  { %1426 = vmatprep.subr.bf16.mxu1 %v1535_v5 }
   0xc   :  { %1261 = vmatmul.mubr.msk.f32.gmra.mrb[2].mxu0 %vm34_vm1, %v23_v18 }
   0xd   :  { %1460 = vmatpush3.bf16.msk.msra.mxu0 %vm1607_vm6, %v1603_v12  ;;  %1263 = vmatprep.mubr.msk.f32.mxu0 %vm34_vm1, %v24_v29 }
   0xe   :  { %1468 = vmatprep.subr.bf16.mxu0 %v1535_v5 }
  0x10   :  { %1264 = vmatmul.mubr.msk.f32.gmra.mrb[4].mxu0 %vm34_vm1, %v25_v30 }
  0x11   :  { %1266 = vmatprep.mubr.msk.f32.mxu0 %vm34_vm1, %v26_v37 }
  0x14   :  { %1267 = vmatmul.mubr.msk.f32.gmra.mrb[6].mxu0 %vm34_vm1, %v27_v42 }
  0x15   :  { %1269 = vmatprep.mubr.msk.f32.mxu0 %vm34_vm1, %v28_v43 }
  0x18   :  { %1270 = vmatmul.mubr.msk.f32.gmra.mrb[8].mxu0 %vm34_vm1, %v29_v44 }
  0x19   :  { %1272 = vmatprep.mubr.msk.f32.mxu0 %vm34_vm1, %v30_v45 }
  0x1c   :  { %1273 = vmatmul.mubr.msk.f32.gmra.mrb[10].mxu0 %vm34_vm1, %v31_v46 }
  0x1d   :  { %1338 = vmatprep.mubr.msk.f32.mxu0 %vm1536_vm4, %v1537_v9 }
  0xdb   :  { %v1259_v14 = vpop.f32.mrb[0].mxu0 }
  0xdc   :  { %v141_v15 = vpop.f32.mrb[1].mxu0 }
  0xdd   :  { %1510 = vtanh.f32 %v141_v15 }
  0xdf   :  { %v1262_v23 = vpop.f32.mrb[2].mxu0 }
  0xe0   :  { %v151_v24 = vpop.f32.mrb[3].mxu0 }
  0xe3   :  { %v1265_v35 = vpop.f32.mrb[4].mxu0 }
  0xe4   :  { %v161_v36 = vpop.f32.mrb[5].mxu0 }
  0xe7   :  { %v1511_v16 = vpop.eup %1510  ;;  %v1268_v51 = vpop.f32.mrb[6].mxu0 }
  0xe8   :  { %1284 = vmatmul.mubr.msk.f32.vlgmr.msra.gmra.mrb[0].mxu1 %vm205_vm7, %v1511_v16  ;;  %v171_v52 = vpop.f32.mrb[7].mxu0 }
  0xe9   :  { %1428 = vmatpush3.bf16.msra.mxu1 %v1596_v10  ;;  %1294 = vmatprep.mubr.msk.f32.mxu1 %vm1536_vm4, %v1537_v9 }
  0xea   :  { %1429 = vmatprep.subr.bf16.mxu1 %v1535_v5 }
  0xeb   :  { %v1271_v53 = vpop.f32.mrb[8].mxu0 }
  0xec   :  { %v181_v54 = vpop.f32.mrb[9].mxu0 }
  0xed   :  { %1432 = vmatpush3.bf16.msk.msra.mxu1 %vm1607_vm6, %v1603_v12 }
  0xee   :  { %1433 = vmatprep.subr.bf16.mxu1 %v1535_v5 }
  0xef   :  { %v1717_v55 = vpop.f32.mrb[10].mxu0 }
  0xf0   :  { %v191_v56 = vpop.f32.mrb[11].mxu0 }
 0x1bb   :  { %v279_v19 = vpop.f32.mrb[0].mxu1 }
 0x1bc   :  { %v283_v20 = vadd.f32 %v1259_v14, %v279_v19  ;;  %v1285_v21 = vpop.f32.mrb[1].mxu1  ;;  %v1043_v19 = vld [vmem:[%s1784_s3 + $0x18] sm:$0xff] }
 0x1bd   :  { %v1044_v21 = vld [vmem:[%s1784_s3 + $0x20] sm:$0xff] }
 0x1be   :  { %1512 = vtanh.f32 %v283_v20  ;;  %v1500_v20 = vpack.c.bf16 %v1043_v19, %v1042_v17 }
 0x1c8   :  { %v1513_v22 = vpop.eup %1512 }
 0x1c9   :  { %1295 = vmatmul.mubr.msk.f32.vlgmr.msra.gmra.mrb[2].mxu1 %vm205_vm7, %v1513_v22  ;;  %v1045_v22 = vld [vmem:[%s1784_s3 + $0x28] sm:$0xff] }
 0x1ca   :  { %1435 = vmatpush3.bf16.msra.mxu1 %v1596_v10  ;;  %1305 = vmatprep.mubr.msk.f32.mxu1 %vm1536_vm4, %v1537_v9 }
 0x1cb   :  { %1436 = vmatprep.subr.bf16.mxu1 %v1535_v5 }
 0x1ce   :  { %1439 = vmatpush3.bf16.msk.msra.mxu1 %vm1607_vm6, %v1603_v12 }
 0x1cf   :  { %1440 = vmatprep.subr.bf16.mxu1 %v1535_v5 }
 0x29c   :  { %v354_v25 = vpop.f32.mrb[2].mxu1 }
 0x29d   :  { %v358_v26 = vadd.f32 %v354_v25, %v151_v24  ;;  %v1296_v27 = vpop.f32.mrb[3].mxu1  ;;  %v1046_v25 = vld [vmem:[%s1784_s3 + $0x30] sm:$0x3] }
 0x29f   :  { %1514 = vtanh.f32 %v358_v26 }
 0x2a9   :  { %v1515_v28 = vpop.eup %1514 }
 0x2aa   :  { %1306 = vmatmul.mubr.msk.f32.vlgmr.msra.gmra.mrb[4].mxu1 %vm205_vm7, %v1515_v28 }
 0x2ab   :  { %1442 = vmatpush3.bf16.msra.mxu1 %v1596_v10  ;;  %1316 = vmatprep.mubr.msk.f32.mxu1 %vm1536_vm4, %v1537_v9 }
 0x2ac   :  { %1443 = vmatprep.subr.bf16.mxu1 %v1535_v5 }
 0x2af   :  { %1446 = vmatpush3.bf16.msk.msra.mxu1 %vm1607_vm6, %v1603_v12 }
 0x2b0   :  { %1447 = vmatprep.subr.bf16.mxu1 %v1535_v5 }
 0x37d   :  { %v429_v31 = vpop.f32.mrb[4].mxu1 }
 0x37e   :  { %v433_v32 = vadd.f32 %v1262_v23, %v429_v31  ;;  %v1307_v33 = vpop.f32.mrb[5].mxu1  ;;  %v1503_v23 = vpack.c.bf16 %v1045_v22, %v1044_v21 }
 0x380   :  { %1516 = vtanh.f32 %v433_v32 }
 0x38a   :  { %v1517_v34 = vpop.eup %1516 }
 0x38b   :  { %1317 = vmatmul.mubr.msk.f32.vlgmr.msra.gmra.mrb[6].mxu1 %vm205_vm7, %v1517_v34 }
 0x38c   :  { %1449 = vmatpush3.bf16.msra.mxu1 %v1596_v10  ;;  %1327 = vmatprep.mubr.msk.f32.mxu1 %vm1536_vm4, %v1537_v9 }
 0x38d   :  { %1450 = vmatprep.subr.bf16.mxu1 %v1535_v5 }
 0x390   :  { %1453 = vmatpush3.bf16.msk.msra.mxu1 %vm1607_vm6, %v1603_v12 }
 0x391   :  { %1461 = vmatprep.subr.bf16.mxu1 %v1535_v5 }
 0x45e   :  { %v504_v38 = vpop.f32.mrb[6].mxu1 }
 0x45f   :  { %v508_v39 = vadd.f32 %v504_v38, %v161_v36  ;;  %v1318_v40 = vpop.f32.mrb[7].mxu1 }
 0x461   :  { %1518 = vtanh.f32 %v508_v39 }
 0x46b   :  { %v1519_v41 = vpop.eup %1518 }
 0x46c   :  { %1328 = vmatmul.mubr.msk.f32.vlgmr.msra.gmra.mrb[8].mxu1 %vm205_vm7, %v1519_v41 }
 0x46d   :  { %1463 = vmatpush3.bf16.msra.mxu1 %v1596_v10  ;;  %1349 = vmatprep.mubr.msk.f32.mxu1 %vm1536_vm4, %v1537_v9 }
 0x46e   :  { %1464 = vmatprep.subr.bf16.mxu1 %v1535_v5 }
 0x471   :  { %1467 = vmatpush3.bf16.msk.msra.mxu1 %vm1607_vm6, %v1603_v12 }
 0x472   :  { %1475 = vmatprep.subr.bf16.mxu1 %v1535_v5 }
 0x53f   :  { %v579_v47 = vpop.f32.mrb[8].mxu1 }
 0x540   :  { %v583_v48 = vadd.f32 %v1265_v35, %v579_v47  ;;  %v1329_v49 = vpop.f32.mrb[9].mxu1 }
 0x542   :  { %1520 = vtanh.f32 %v583_v48 }
 0x54c   :  { %v1521_v50 = vpop.eup %1520 }
 0x54d   :  { %1339 = vmatmul.mubr.msk.f32.vlgmr.msra.gmra.mrb[12].mxu0 %vm205_vm7, %v1521_v50 }
 0x54e   :  { %1470 = vmatpush3.bf16.msra.mxu0 %v1596_v10  ;;  %1360 = vmatprep.mubr.msk.f32.mxu0 %vm1536_vm4, %v1537_v9 }
 0x54f   :  { %1471 = vmatprep.subr.bf16.mxu0 %v1535_v5 }
 0x552   :  { %1474 = vmatpush3.bf16.msk.msra.mxu0 %vm1607_vm6, %v1603_v12 }
 0x553   :  { %1482 = vmatprep.subr.bf16.mxu0 %v1535_v5 }
 0x620   :  { %v654_v57 = vpop.f32.mrb[12].mxu0 }
 0x621   :  { %v658_v58 = vadd.f32 %v654_v57, %v171_v52  ;;  %v1340_v59 = vpop.f32.mrb[13].mxu0 }
 0x623   :  { %1522 = vtanh.f32 %v658_v58 }
 0x62d   :  { %v1523_v60 = vpop.eup %1522 }
 0x62e   :  { %1350 = vmatmul.mubr.msk.f32.vlgmr.msra.gmra.mrb[10].mxu1 %vm205_vm7, %v1523_v60 }
 0x62f   :  { %1477 = vmatpush3.bf16.msra.mxu1 %v1596_v10  ;;  %1371 = vmatprep.mubr.msk.f32.mxu1 %vm1536_vm4, %v1537_v9 }
 0x630   :  { %1478 = vmatprep.subr.bf16.mxu1 %v1535_v5 }
 0x633   :  { %1481 = vmatpush3.bf16.msk.msra.mxu1 %vm1607_vm6, %v1603_v12 }
 0x634   :  { %1489 = vmatprep.subr.bf16.mxu1 %v1535_v5 }
 0x701   :  { %v729_v61 = vpop.f32.mrb[10].mxu1 }
 0x702   :  { %v733_v62 = vadd.f32 %v1268_v51, %v729_v61  ;;  %v1351_v63 = vpop.f32.mrb[11].mxu1 }
 0x704   :  { %1524 = vtanh.f32 %v733_v62 }
 0x70e   :  { %v1525_v0 = vpop.eup %1524 }
 0x70f   :  { %1361 = vmatmul.mubr.msk.f32.vlgmr.msra.gmra.mrb[14].mxu0 %vm205_vm7, %v1525_v0 }
 0x710   :  { %1484 = vmatpush3.bf16.msra.mxu0 %v1596_v10  ;;  %1382 = vmatprep.mubr.msk.f32.mxu0 %vm1536_vm4, %v1537_v9 }
 0x711   :  { %1485 = vmatprep.subr.bf16.mxu0 %v1535_v5 }
 0x714   :  { %1488 = vmatpush3.bf16.msk.msra.mxu0 %vm1607_vm6, %v1603_v12 }
 0x715   :  { %1496 = vmatprep.subr.bf16.mxu0 %v1535_v5 }
 0x7e2   :  { %v804_v1 = vpop.f32.mrb[14].mxu0 }
 0x7e3   :  { %v808_v2 = vadd.f32 %v804_v1, %v181_v54  ;;  %v1362_v3 = vpop.f32.mrb[15].mxu0 }
 0x7e5   :  { %1526 = vtanh.f32 %v808_v2 }
 0x7ef   :  { %v1527_v4 = vpop.eup %1526 }
 0x7f0   :  { %1372 = vmatmul.mubr.msk.f32.vlgmr.msra.gmra.mrb[12].mxu1 %vm205_vm7, %v1527_v4 }
 0x7f1   :  { %1491 = vmatpush3.bf16.msra.mxu1 %v1596_v10  ;;  %1393 = vmatprep.mubr.msk.f32.mxu1 %vm1536_vm4, %v1537_v9 }
 0x7f2   :  { %1492 = vmatprep.subr.bf16.mxu1 %v1535_v5 }
 0x7f5   :  { %1495 = vmatpush3.bf16.msk.msra.mxu1 %vm1607_vm6, %v1603_v12  ;;  %v1040_v12 = vld [vmem:[%s1784_s3] sm:$0xff] }
 0x7f6   :  { %v1497_v18 = vpack.c.bf16 %v1041_v13, %v1040_v12 }
 0x8c3   :  { %v879_v6 = vpop.f32.mrb[12].mxu1 }
 0x8c4   :  { %v883_v7 = vadd.f32 %v1271_v53, %v879_v6  ;;  %v1373_v8 = vpop.f32.mrb[13].mxu1 }
 0x8c6   :  { %1528 = vtanh.f32 %v883_v7 }
 0x8d0   :  { %v1529_v11 = vpop.eup %1528 }
 0x8d1   :  { %1383 = vmatmul.mubr.msk.f32.vlgmr.msra.gmra.mrb[16].mxu0 %vm205_vm7, %v1529_v11 }
 0x8d2   :  { %1410 = vmatprep.mubr.msk.f32.mxu0 %vm1536_vm4, %v1537_v9  ;;  %1498 = vmatpush3.bf16.msra.mxu0 %v1497_v18 }
 0x8d3   :  { %1499 = vmatprep.subr.bf16.mxu0 %v1535_v5 }
 0x8d6   :  { %1501 = vmatpush3.bf16.msra.mxu0 %v1500_v20 }
 0x8d7   :  { %1502 = vmatprep.subr.bf16.mxu0 %v1535_v5 }
 0x8da   :  { %1504 = vmatpush3.bf16.msra.mxu0 %v1503_v23 }
 0x8db   :  { %1408 = vmatprep.subr.mxu0 %v1537_v9  ;;  %v1173_v9 = vld [vmem:[%s1785_s4] ss:$0 sm:$0xff] }
 0x8de   :  { %1409 = vmatpush3.msk.msra.mxu0 %vm1058_vm8, %v1046_v25 }
 0x9a4   :  { %v954_v10 = vpop.f32.mrb[16].mxu0 }
 0x9a5   :  { %v958_v14 = vadd.f32 %v954_v10, %v191_v56  ;;  %v1384_v15 = vpop.f32.mrb[17].mxu0 }
 0x9a7   :  { %1530 = vtanh.f32 %v958_v14 }
 0x9b1   :  { %v1531_v16 = vpop.eup %1530 }
 0x9b2   :  { %1394 = vmatmul.mubr.msk.f32.vlgmr.msra.gmra.mrb[14].mxu1 %vm205_vm7, %v1531_v16 }
 0xa85   :  { %v1029_v24 = vpop.f32.mrb[14].mxu1 }
 0xa86   :  { %v1033_v26 = vadd.f32 %v1717_v55, %v1029_v24  ;;  %v1395_v27 = vpop.f32.mrb[15].mxu1 }
 0xa88   :  { %1532 = vtanh.f32 %v1033_v26 }
 0xa92   :  { %v1533_v28 = vpop.eup %1532 }
 0xa93   :  { %1036 = vrot.lane.b32.xlu0 %v1533_v28, %s1538_s13 }
 0xb05   :  { %v1037_v29 = vpop.permute.xlu0 %1036 }
 0xb06   :  { %v1039_v5 = vsel %vm205_vm7, %v1531_v16, %v1037_v29 }
 0xb07   :  { %1411 = vmatmul.mubr.msk.f32.vlgmr.msra.gmra.mrb[18].mxu0 %vm1054_vm9, %v1039_v5 }
 0xbda   :  { %v1128_v30 = vpop.f32.mrb[18].mxu0 }
 0xbdb   :  { %v1129_v31 = vadd.f32 %v1173_v9, %v1128_v30  ;;  %v1412_v32 = vpop.f32.mrb[19].mxu0 }
 0xbdd   :  { %1133 = vst.msk [vmem:[%s1786_s5] sm:$0xff] %vm1132_vm10, %v1129_v31 }

</bundles_post_ra>
